<compile_context>
chip_gen: v7x
topology: tpu7x:2x2x1
jax: 0.10.0
libtpu: 0.0.40
codegen_flags: <defaults>
</compile_context>

<pallas_src>
import jax
import jax.numpy as jnp
from jax.experimental import pallas as pl
from jax.experimental.pallas import tpu as pltpu

EPS = 1e-5  # rl_games RunningMeanStd epsilon


def _elu(x):
    # ELU(alpha=1). exp-based form (guaranteed Mosaic lowering); differs from
    # torch's expm1 formulation by < 1e-7 which is far below bf16 MXU noise.
    return jnp.where(x > 0.0, x, jnp.exp(jnp.minimum(x, 0.0)) - 1.0)


def _round_up(x, m):
    return ((x + m - 1) // m) * m


def _pad_bytes(rows, cols, itemsize, sublane):
    # VMEM footprint of a (rows, cols) buffer after (sublane, 128) layout padding.
    return _round_up(max(rows, 1), sublane) * _round_up(max(cols, 1), 128) * itemsize


# ---------------------------------------------------------------------------
# Kernel: batch-on-lanes (transposed) layout, bf16 MXU inputs, f32 accumulate.
# ---------------------------------------------------------------------------
def _cv_kernel(
    obs_ref,       # (TB, OBS)   float32 or uint8
    in_mean_ref,   # (1, OBS)    f32  (already includes the /255 fold for uint8 obs)
    in_istd_ref,   # (1, OBS)    f32  precomputed rsqrt(var + eps) (scaled for uint8)
    w1t_ref,       # (H1, OBS)   bf16
    b1_ref,        # (H1, 1)     f32
    w2t_ref,       # (H2, H1)    bf16
    b2_ref,        # (H2, 1)     f32
    wvt_ref,       # (V, H2)     bf16
    bv_ref,        # (V, 1)      f32
    vstd_ref,      # (V, 1)      f32  sqrt(val_var + eps)
    vmean_ref,     # (V, 1)      f32  val_mean
    out_ref,       # (V, TB)     f32  lane-dense output slab
):
    # uint8 obs converted in-register (the /255 preproc is folded into the stats).
    x = obs_ref[...]
    if x.dtype != jnp.float32:
        x = x.astype(jnp.int32).astype(jnp.float32)
    x = (x - in_mean_ref[...]) * in_istd_ref[...]
    x = jnp.clip(x, -5.0, 5.0).astype(jnp.bfloat16)

    # (H1, OBS) contracted with (TB, OBS) over OBS -> (H1, TB): batch lands on the
    # lane axis, so bias/ELU and everything downstream is lane-dense even though
    # H1/H2 are small.  bf16 MXU inputs, f32 accumulation.
    h1 = jax.lax.dot_general(
        w1t_ref[...], x,
        dimension_numbers=(((1,), (1,)), ((), ())),
        preferred_element_type=jnp.float32)
    h1 = _elu(h1 + b1_ref[...]).astype(jnp.bfloat16)

    h2 = jnp.dot(w2t_ref[...], h1, preferred_element_type=jnp.float32)
    h2 = _elu(h2 + b2_ref[...]).astype(jnp.bfloat16)

    v = jnp.dot(wvt_ref[...], h2, preferred_element_type=jnp.float32) + bv_ref[...]
    # rl_games value_mean_std de-normalization (is_train=False):
    #   clamp(-5, 5), then * sqrt(var + eps) + mean.
    v = jnp.clip(v, -5.0, 5.0)
    out_ref[...] = v * vstd_ref[...] + vmean_ref[...]


# ---------------------------------------------------------------------------
# Wrapper (get_value semantics)
# ---------------------------------------------------------------------------
def central_value_forward(obs, params, *, num_agents=1, max_tile_b=4096):
    """get_value path: returns values of shape [batch * num_agents, value_size]."""
    obs_is_u8 = obs.dtype == jnp.uint8
    if not obs_is_u8:
        obs = obs.astype(jnp.float32)

    B, OBS = obs.shape
    H1 = params["w1"].shape[1]
    H2 = params["w2"].shape[1]
    V = params["wv"].shape[1]

    # Host-side constant prep (RunningMeanStd stats are constants at eval time).
    in_mean = params["in_mean"].astype(jnp.float32).reshape(1, OBS)
    in_istd = jax.lax.rsqrt(params["in_var"].astype(jnp.float32).reshape(1, OBS) + EPS)
    if obs_is_u8:
        # Fold the uint8 /255 preproc into the stats (no f32 obs copy in HBM):
        #   ((x/255) - m) * istd == (x - 255*m) * (istd/255)
        in_mean = in_mean * 255.0
        in_istd = in_istd / 255.0

    # Transposed (feature-major) weights, cast to bf16 for the MXU; biases and
    # value de-norm stats as (feat, 1) columns that broadcast over the lane axis.
    w1t = params["w1"].astype(jnp.float32).T.astype(jnp.bfloat16)    # (H1, OBS)
    w2t = params["w2"].astype(jnp.float32).T.astype(jnp.bfloat16)    # (H2, H1)
    wvt = params["wv"].astype(jnp.float32).T.astype(jnp.bfloat16)    # (V, H2)
    b1 = params["b1"].astype(jnp.float32).reshape(H1, 1)
    b2 = params["b2"].astype(jnp.float32).reshape(H2, 1)
    bv = params["bv"].astype(jnp.float32).reshape(V, 1)
    vstd = jnp.sqrt(params["val_var"].astype(jnp.float32) + EPS).reshape(V, 1)
    vmean = params["val_mean"].astype(jnp.float32).reshape(V, 1)

    # ---- generation-aware VMEM budget & batch-tile selection ---------------
    vmem_cap = 64 * 1024 * 1024
    try:
        vmem_cap = int(getattr(pltpu.get_tpu_info(), "vmem_capacity_bytes", vmem_cap))
    except Exception:
        pass
    budget = vmem_cap // 2  # leave generous headroom for compiler scratch

    obs_item = 1 if obs_is_u8 else 4
    obs_sub = 32 if obs_is_u8 else 8

    def footprint(tb):
        # padded-layout bytes: double-buffered obs tile + output tile,
        # live intermediates (f32 + bf16), double-buffered constant operands.
        total = 2 * _pad_bytes(tb, OBS, obs_item, obs_sub)
        total += 2 * _pad_bytes(V, tb, 4, 8)
        total += (_pad_bytes(tb, OBS, 4, 8) + _pad_bytes(tb, OBS, 2, 16)
                  + _pad_bytes(H1, tb, 4, 8) + _pad_bytes(H1, tb, 2, 16)
                  + _pad_bytes(H2, tb, 4, 8) + _pad_bytes(H2, tb, 2, 16)
                  + _pad_bytes(V, tb, 4, 8))
        total += 2 * (_pad_bytes(H1, OBS, 2, 16) + _pad_bytes(H2, H1, 2, 16)
                      + _pad_bytes(V, H2, 2, 16)
                      + 2 * _pad_bytes(1, OBS, 4, 8)
                      + _pad_bytes(H1, 1, 4, 8) + _pad_bytes(H2, 1, 4, 8)
                      + 3 * _pad_bytes(V, 1, 4, 8))
        return total

    tile_cap = max(128, (max_tile_b // 128) * 128)
    while tile_cap > 128 and footprint(tile_cap) > budget:
        tile_cap = max(128, ((tile_cap // 2) // 128) * 128)

    if B <= 128:
        # Single full-array block: block dims equal to the array dims are always
        # legal, so no host-side padding is needed for tiny / ragged batches.
        tile_eff = B
    else:
        # At least two batch tiles so a "parallel" grid can shard over both v7x
        # TensorCores; tiles are 128-row aligned and capped by the VMEM budget.
        tile_eff = max(128, min(tile_cap, _round_up(pl.cdiv(B, 2), 128)))
    grid = (pl.cdiv(B, tile_eff),)   # ragged tail handled by Pallas OOB masking

    need = footprint(tile_eff)
    vmem_limit = int(min(max(2 * need, 32 * 1024 * 1024), (3 * vmem_cap) // 4))

    cost = pl.CostEstimate(
        flops=2 * B * (OBS * H1 + H1 * H2 + H2 * V),
        transcendentals=B * (H1 + H2),
        bytes_accessed=(B * OBS * obs_item
                        + 2 * (OBS * H1 + H1 * H2 + H2 * V)
                        + 4 * (2 * OBS + H1 + H2 + 3 * V)
                        + 4 * B * V),
    )

    def _const(r, c):
        return pl.BlockSpec((r, c), lambda i: (0, 0))

    out = pl.pallas_call(
        _cv_kernel,
        out_shape=jax.ShapeDtypeStruct((V, B), jnp.float32),
        grid=grid,
        in_specs=[
            pl.BlockSpec((tile_eff, OBS), lambda i: (i, 0)),   # obs tile (batch-parallel)
            _const(1, OBS),    # in_mean
            _const(1, OBS),    # in_istd
            _const(H1, OBS),   # w1^T (bf16)
            _const(H1, 1),     # b1
            _const(H2, H1),    # w2^T (bf16)
            _const(H2, 1),     # b2
            _const(V, H2),     # wv^T (bf16)
            _const(V, 1),      # bv
            _const(V, 1),      # sqrt(val_var + eps)
            _const(V, 1),      # val_mean
        ],
        out_specs=pl.BlockSpec((V, tile_eff), lambda i: (0, i)),
        compiler_params=pltpu.CompilerParams(
            dimension_semantics=("parallel",),
            vmem_limit_bytes=vmem_limit,
        ),
        cost_estimate=cost,
    )(obs, in_mean, in_istd, w1t, b1, w2t, b2, wvt, bv, vstd, vmean)

    value = out.T   # (B, V); lane-dense inside the kernel, tiny host transpose

    if num_agents > 1:
        # value.repeat(1, num_agents).view(B * num_agents, -1)
        value = jnp.tile(value, (1, num_agents)).reshape(B * num_agents, V)
    return value


# ---------------------------------------------------------------------------
# Params / pure-JAX reference (module semantics, f32)
# ---------------------------------------------------------------------------
def init_params(key, obs_dim, h1, h2, value_size):
    ks = jax.random.split(key, 6)

    def linear(k, fan_in, fan_out):
        # torch.nn.Linear default init: U(-1/sqrt(fan_in), 1/sqrt(fan_in))
        bound = 1.0 / jnp.sqrt(fan_in)
        kw, kb = jax.random.split(k)
        w = jax.random.uniform(kw, (fan_in, fan_out), jnp.float32, -bound, bound)
        b = jax.random.uniform(kb, (1, fan_out), jnp.float32, -bound, bound)
        return w, b

    w1, b1 = linear(ks[0], obs_dim, h1)
    w2, b2 = linear(ks[1], h1, h2)
    wv, bv = linear(ks[2], h2, value_size)

    return {
        "in_mean": jax.random.normal(ks[3], (1, obs_dim), jnp.float32) * 0.1,
        "in_var": jnp.ones((1, obs_dim), jnp.float32) * 1.5,
        "w1": w1, "b1": b1,
        "w2": w2, "b2": b2,
        "wv": wv, "bv": bv,
        "val_mean": jax.random.normal(ks[4], (1, value_size), jnp.float32) * 0.5,
        "val_var": jnp.ones((1, value_size), jnp.float32) * 2.0,
    }


def reference_forward(obs, params, num_agents):
    # full-f32 reference following the module / rl_games semantics
    if obs.dtype == jnp.uint8:
        obs = obs.astype(jnp.float32) / 255.0
    obs = obs.astype(jnp.float32)
    x = jnp.clip((obs - params["in_mean"]) / jnp.sqrt(params["in_var"] + EPS), -5.0, 5.0)
    h1 = _elu(x @ params["w1"] + params["b1"])
    h2 = _elu(h1 @ params["w2"] + params["b2"])
    v = h2 @ params["wv"] + params["bv"]
    v = jnp.clip(v, -5.0, 5.0)                                   # value_mean_std denorm
    v = v * jnp.sqrt(params["val_var"] + EPS) + params["val_mean"]
    if num_agents > 1:
        v = jnp.tile(v, (1, num_agents)).reshape(v.shape[0] * num_agents, -1)
    return v


# TODO(synk): training path (critic_loss, Adam step, multi-GPU all_reduce, grad
# clipping, RNN state bookkeeping, PPODataset plumbing) has no clean single-kernel
# Pallas equivalent and is out of scope here.

if __name__ == "__main__":
    key = jax.random.PRNGKey(0)
    k1, k2, k3, k4, k5, k6 = jax.random.split(key, 6)

    OBS, H1, H2 = 32, 64, 32
    # Kernel feeds the MXU with bf16 operands (f32 accumulation); compare against
    # the full-f32 reference with a bf16-appropriate tolerance.
    TOL = 3e-2

    # --- Test 1: f32 obs, small ragged batch, value_size=1, 2 agents (1 block) ---
    B1, V1, NA1 = 19, 1, 2
    obs1 = jax.random.normal(k1, (B1, OBS), jnp.float32)
    p1 = init_params(k2, OBS, H1, H2, V1)
    out1 = jax.block_until_ready(central_value_forward(obs1, p1, num_agents=NA1))
    ref1 = reference_forward(obs1, p1, NA1)
    assert out1.shape == (B1 * NA1, V1), out1.shape
    assert jnp.allclose(out1, ref1, atol=TOL, rtol=TOL), float(jnp.max(jnp.abs(out1 - ref1)))

    # --- Test 2: f32 obs, ragged multi-tile batch (2 tiles over 300 rows), V=3 ---
    B2, V2 = 300, 3
    obs2 = jax.random.normal(k3, (B2, OBS), jnp.float32)
    p2 = init_params(k4, OBS, H1, H2, V2)
    out2 = jax.block_until_ready(central_value_forward(obs2, p2, num_agents=1))
    ref2 = reference_forward(obs2, p2, 1)
    assert out2.shape == (B2, V2), out2.shape
    assert jnp.allclose(out2, ref2, atol=TOL, rtol=TOL), float(jnp.max(jnp.abs(out2 - ref2)))

    # --- Test 3: uint8 obs fed straight to the kernel (no host f32/255 copy) ---
    B3, V3 = 64, 1
    obs3 = jax.random.randint(k5, (B3, OBS), 0, 256, jnp.int32).astype(jnp.uint8)
    p3 = init_params(k6, OBS, H1, H2, V3)
    out3 = jax.block_until_ready(central_value_forward(obs3, p3, num_agents=1))
    ref3 = reference_forward(obs3, p3, 1)
    assert out3.shape == (B3, V3), out3.shape
    assert jnp.allclose(out3, ref3, atol=TOL, rtol=TOL), float(jnp.max(jnp.abs(out3 - ref3)))

    print("KERNEL_OK")
</pallas_src>

<mosaic_0001>
module attributes {stable_mosaic.version = 11 : i64} {
  func.func @_cv_kernel(%arg0: i32, %arg1: memref<19x32xf32, #tpu.memory_space<vmem>>, %arg2: memref<1x32xf32, #tpu.memory_space<vmem>>, %arg3: memref<1x32xf32, #tpu.memory_space<vmem>>, %arg4: memref<64x32xbf16, #tpu.memory_space<vmem>>, %arg5: memref<64x1xf32, #tpu.memory_space<vmem>>, %arg6: memref<32x64xbf16, #tpu.memory_space<vmem>>, %arg7: memref<32x1xf32, #tpu.memory_space<vmem>>, %arg8: memref<1x32xbf16, #tpu.memory_space<vmem>>, %arg9: memref<1x1xf32, #tpu.memory_space<vmem>>, %arg10: memref<1x1xf32, #tpu.memory_space<vmem>>, %arg11: memref<1x1xf32, #tpu.memory_space<vmem>>, %arg12: memref<1x19xf32, #tpu.memory_space<vmem>>) attributes {dimension_semantics = [#tpu.dimension_semantics<parallel>], iteration_bounds = array<i64: 1>, scalar_prefetch = 0 : i64, scratch_operands = 0 : i64, tpu.core_type = #tpu.core_type<tc>, window_params = [{transform_indices = @transform_0, window_bounds = array<i64: 19, 32>}, {pipeline_mode = #tpu.pipeline_mode<synchronous>, transform_indices = @transform_1, window_bounds = array<i64: 1, 32>}, {pipeline_mode = #tpu.pipeline_mode<synchronous>, transform_indices = @transform_2, window_bounds = array<i64: 1, 32>}, {pipeline_mode = #tpu.pipeline_mode<synchronous>, transform_indices = @transform_3, window_bounds = array<i64: 64, 32>}, {pipeline_mode = #tpu.pipeline_mode<synchronous>, transform_indices = @transform_4, window_bounds = array<i64: 64, 1>}, {pipeline_mode = #tpu.pipeline_mode<synchronous>, transform_indices = @transform_5, window_bounds = array<i64: 32, 64>}, {pipeline_mode = #tpu.pipeline_mode<synchronous>, transform_indices = @transform_6, window_bounds = array<i64: 32, 1>}, {pipeline_mode = #tpu.pipeline_mode<synchronous>, transform_indices = @transform_7, window_bounds = array<i64: 1, 32>}, {pipeline_mode = #tpu.pipeline_mode<synchronous>, transform_indices = @transform_8, window_bounds = array<i64: 1, 1>}, {pipeline_mode = #tpu.pipeline_mode<synchronous>, transform_indices = @transform_9, window_bounds = array<i64: 1, 1>}, {pipeline_mode = #tpu.pipeline_mode<synchronous>, transform_indices = @transform_10, window_bounds = array<i64: 1, 1>}, {transform_indices = @transform_11, window_bounds = array<i64: 1, 19>}]} {
    %c0 = arith.constant 0 : index
    %c0_0 = arith.constant 0 : index
    %0 = vector.load %arg1[%c0, %c0_0] : memref<19x32xf32, #tpu.memory_space<vmem>>, vector<19x32xf32>
    %c0_1 = arith.constant 0 : index
    %c0_2 = arith.constant 0 : index
    %1 = vector.load %arg2[%c0_1, %c0_2] : memref<1x32xf32, #tpu.memory_space<vmem>>, vector<1x32xf32>
    %2 = vector.broadcast %1 : vector<1x32xf32> to vector<19x32xf32>
    %3 = arith.subf %0, %2 : vector<19x32xf32>
    %c0_3 = arith.constant 0 : index
    %c0_4 = arith.constant 0 : index
    %4 = vector.load %arg3[%c0_3, %c0_4] : memref<1x32xf32, #tpu.memory_space<vmem>>, vector<1x32xf32>
    %5 = vector.broadcast %4 : vector<1x32xf32> to vector<19x32xf32>
    %6 = arith.mulf %3, %5 : vector<19x32xf32>
    %cst = arith.constant -5.000000e+00 : f32
    %cst_5 = arith.constant 5.000000e+00 : f32
    %7 = vector.broadcast %cst : f32 to vector<19x32xf32>
    %8 = arith.maximumf %7, %6 : vector<19x32xf32>
    %9 = vector.broadcast %cst_5 : f32 to vector<19x32xf32>
    %10 = arith.minimumf %9, %8 : vector<19x32xf32>
    %11 = arith.truncf %10 : vector<19x32xf32> to vector<19x32xbf16>
    %c0_6 = arith.constant 0 : index
    %c0_7 = arith.constant 0 : index
    %12 = vector.load %arg4[%c0_6, %c0_7] : memref<64x32xbf16, #tpu.memory_space<vmem>>, vector<64x32xbf16>
    %cst_8 = arith.constant dense<0.000000e+00> : vector<64x19xf32>
    %13 = tpu.matmul %12, %11, %cst_8 {dimension_numbers = #tpu.dot_dimension_numbers<[1], [1], [0], [0], [0, 0, 1, 0], [], []>} : vector<64x32xbf16>, vector<19x32xbf16>, vector<64x19xf32> -> vector<64x19xf32>
    %c0_9 = arith.constant 0 : index
    %c0_10 = arith.constant 0 : index
    %14 = vector.load %arg5[%c0_9, %c0_10] : memref<64x1xf32, #tpu.memory_space<vmem>>, vector<64x1xf32>
    %15 = vector.broadcast %14 : vector<64x1xf32> to vector<64x19xf32>
    %16 = arith.addf %13, %15 : vector<64x19xf32>
    %cst_11 = arith.constant 0.000000e+00 : f32
    %17 = vector.broadcast %cst_11 : f32 to vector<64x19xf32>
    %18 = arith.cmpf ogt, %16, %17 : vector<64x19xf32>
    %cst_12 = arith.constant 0.000000e+00 : f32
    %19 = vector.broadcast %cst_12 : f32 to vector<64x19xf32>
    %20 = arith.minimumf %16, %19 : vector<64x19xf32>
    %21 = math.exp %20 : vector<64x19xf32>
    %cst_13 = arith.constant 1.000000e+00 : f32
    %22 = vector.broadcast %cst_13 : f32 to vector<64x19xf32>
    %23 = arith.subf %21, %22 : vector<64x19xf32>
    %24 = arith.select %18, %16, %23 : vector<64x19xi1>, vector<64x19xf32>
    %25 = arith.truncf %24 : vector<64x19xf32> to vector<64x19xbf16>
    %c0_14 = arith.constant 0 : index
    %c0_15 = arith.constant 0 : index
    %26 = vector.load %arg6[%c0_14, %c0_15] : memref<32x64xbf16, #tpu.memory_space<vmem>>, vector<32x64xbf16>
    %cst_16 = arith.constant dense<0.000000e+00> : vector<32x19xf32>
    %27 = tpu.matmul %26, %25, %cst_16 {dimension_numbers = #tpu.dot_dimension_numbers<[1], [0], [0], [1], [0, 0, 1, 1], [], []>} : vector<32x64xbf16>, vector<64x19xbf16>, vector<32x19xf32> -> vector<32x19xf32>
    %c0_17 = arith.constant 0 : index
    %c0_18 = arith.constant 0 : index
    %28 = vector.load %arg7[%c0_17, %c0_18] : memref<32x1xf32, #tpu.memory_space<vmem>>, vector<32x1xf32>
    %29 = vector.broadcast %28 : vector<32x1xf32> to vector<32x19xf32>
    %30 = arith.addf %27, %29 : vector<32x19xf32>
    %cst_19 = arith.constant 0.000000e+00 : f32
    %31 = vector.broadcast %cst_19 : f32 to vector<32x19xf32>
    %32 = arith.cmpf ogt, %30, %31 : vector<32x19xf32>
    %cst_20 = arith.constant 0.000000e+00 : f32
    %33 = vector.broadcast %cst_20 : f32 to vector<32x19xf32>
    %34 = arith.minimumf %30, %33 : vector<32x19xf32>
    %35 = math.exp %34 : vector<32x19xf32>
    %cst_21 = arith.constant 1.000000e+00 : f32
    %36 = vector.broadcast %cst_21 : f32 to vector<32x19xf32>
    %37 = arith.subf %35, %36 : vector<32x19xf32>
    %38 = arith.select %32, %30, %37 : vector<32x19xi1>, vector<32x19xf32>
    %39 = arith.truncf %38 : vector<32x19xf32> to vector<32x19xbf16>
    %c0_22 = arith.constant 0 : index
    %c0_23 = arith.constant 0 : index
    %40 = vector.load %arg8[%c0_22, %c0_23] : memref<1x32xbf16, #tpu.memory_space<vmem>>, vector<1x32xbf16>
    %cst_24 = arith.constant dense<0.000000e+00> : vector<1x19xf32>
    %41 = tpu.matmul %40, %39, %cst_24 {dimension_numbers = #tpu.dot_dimension_numbers<[1], [0], [0], [1], [0, 0, 1, 1], [], []>} : vector<1x32xbf16>, vector<32x19xbf16>, vector<1x19xf32> -> vector<1x19xf32>
    %c0_25 = arith.constant 0 : index
    %c0_26 = arith.constant 0 : index
    %42 = vector.load %arg9[%c0_25, %c0_26] : memref<1x1xf32, #tpu.memory_space<vmem>>, vector<1x1xf32>
    %43 = vector.broadcast %42 : vector<1x1xf32> to vector<1x19xf32>
    %44 = arith.addf %41, %43 : vector<1x19xf32>
    %cst_27 = arith.constant -5.000000e+00 : f32
    %cst_28 = arith.constant 5.000000e+00 : f32
    %45 = vector.broadcast %cst_27 : f32 to vector<1x19xf32>
    %46 = arith.maximumf %45, %44 : vector<1x19xf32>
    %47 = vector.broadcast %cst_28 : f32 to vector<1x19xf32>
    %48 = arith.minimumf %47, %46 : vector<1x19xf32>
    %c0_29 = arith.constant 0 : index
    %c0_30 = arith.constant 0 : index
    %49 = vector.load %arg10[%c0_29, %c0_30] : memref<1x1xf32, #tpu.memory_space<vmem>>, vector<1x1xf32>
    %50 = vector.broadcast %49 : vector<1x1xf32> to vector<1x19xf32>
    %51 = arith.mulf %48, %50 : vector<1x19xf32>
    %c0_31 = arith.constant 0 : index
    %c0_32 = arith.constant 0 : index
    %52 = vector.load %arg11[%c0_31, %c0_32] : memref<1x1xf32, #tpu.memory_space<vmem>>, vector<1x1xf32>
    %53 = vector.broadcast %52 : vector<1x1xf32> to vector<1x19xf32>
    %54 = arith.addf %51, %53 : vector<1x19xf32>
    %c0_33 = arith.constant 0 : index
    %c0_34 = arith.constant 0 : index
    %55 = vector.load %arg12[%c0_33, %c0_34] : memref<1x19xf32, #tpu.memory_space<vmem>>, vector<1x19xf32>
    tpu.vector_store %arg12[%c0_33, %c0_34], %54 {strides = array<i32>} : memref<1x19xf32, #tpu.memory_space<vmem>>, vector<1x19xf32>,
    return
  }
  func.func @transform_0(%arg0: i32) -> (i32, i32) {
    %c0_i32 = arith.constant 0 : i32
    %c0_i32_0 = arith.constant 0 : i32
    return %arg0, %c0_i32 : i32, i32
  }
  func.func @transform_1(%arg0: i32) -> (i32, i32) {
    %c0_i32 = arith.constant 0 : i32
    %c0_i32_0 = arith.constant 0 : i32
    %c0_i32_1 = arith.constant 0 : i32
    return %c0_i32, %c0_i32_0 : i32, i32
  }
  func.func @transform_2(%arg0: i32) -> (i32, i32) {
    %c0_i32 = arith.constant 0 : i32
    %c0_i32_0 = arith.constant 0 : i32
    %c0_i32_1 = arith.constant 0 : i32
    return %c0_i32, %c0_i32_0 : i32, i32
  }
  func.func @transform_3(%arg0: i32) -> (i32, i32) {
    %c0_i32 = arith.constant 0 : i32
    %c0_i32_0 = arith.constant 0 : i32
    %c0_i32_1 = arith.constant 0 : i32
    return %c0_i32, %c0_i32_0 : i32, i32
  }
  func.func @transform_4(%arg0: i32) -> (i32, i32) {
    %c0_i32 = arith.constant 0 : i32
    %c0_i32_0 = arith.constant 0 : i32
    %c0_i32_1 = arith.constant 0 : i32
    return %c0_i32, %c0_i32_0 : i32, i32
  }
  func.func @transform_5(%arg0: i32) -> (i32, i32) {
    %c0_i32 = arith.constant 0 : i32
    %c0_i32_0 = arith.constant 0 : i32
    %c0_i32_1 = arith.constant 0 : i32
    return %c0_i32, %c0_i32_0 : i32, i32
  }
  func.func @transform_6(%arg0: i32) -> (i32, i32) {
    %c0_i32 = arith.constant 0 : i32
    %c0_i32_0 = arith.constant 0 : i32
    %c0_i32_1 = arith.constant 0 : i32
    return %c0_i32, %c0_i32_0 : i32, i32
  }
  func.func @transform_7(%arg0: i32) -> (i32, i32) {
    %c0_i32 = arith.constant 0 : i32
    %c0_i32_0 = arith.constant 0 : i32
    %c0_i32_1 = arith.constant 0 : i32
    return %c0_i32, %c0_i32_0 : i32, i32
  }
  func.func @transform_8(%arg0: i32) -> (i32, i32) {
    %c0_i32 = arith.constant 0 : i32
    %c0_i32_0 = arith.constant 0 : i32
    %c0_i32_1 = arith.constant 0 : i32
    return %c0_i32, %c0_i32_0 : i32, i32
  }
  func.func @transform_9(%arg0: i32) -> (i32, i32) {
    %c0_i32 = arith.constant 0 : i32
    %c0_i32_0 = arith.constant 0 : i32
    %c0_i32_1 = arith.constant 0 : i32
    return %c0_i32, %c0_i32_0 : i32, i32
  }
  func.func @transform_10(%arg0: i32) -> (i32, i32) {
    %c0_i32 = arith.constant 0 : i32
    %c0_i32_0 = arith.constant 0 : i32
    %c0_i32_1 = arith.constant 0 : i32
    return %c0_i32, %c0_i32_0 : i32, i32
  }
  func.func @transform_11(%arg0: i32) -> (i32, i32) {
    %c0_i32 = arith.constant 0 : i32
    %c0_i32_0 = arith.constant 0 : i32
    return %c0_i32, %arg0 : i32, i32
  }
}

</mosaic_0001>

<bundles_post_ra>
// kernel: tpu_custom_call.1
= control target key start
LH: loop header
LB: loop body
LE: loop exit
PB: predicated region body
PF: predicated region fallthrough
CT: control target
= control target key end

     0   :  { %s811_s0 = inlined_call_operand.vmem [shape: f32[19,32], index: 0, kind: input, shape index: {}]   ;;  %s812_s1 = inlined_call_operand.vmem [shape: f32[1,32], index: 1, kind: input, shape index: {}]   ;;  %s813_s2 = inlined_call_operand.vmem [shape: f32[1,32], index: 2, kind: input, shape index: {}]   ;;  %s814_s3 = inlined_call_operand.vmem [shape: bf16[64,32], index: 3, kind: input, shape index: {}]   ;;  %s815_s4 = inlined_call_operand.vmem [shape: f32[64,1], index: 4, kind: input, shape index: {}]   ;;  %s816_s5 = inlined_call_operand.vmem [shape: bf16[32,64], index: 5, kind: input, shape index: {}]   ;;  %s817_s6 = inlined_call_operand.vmem [shape: f32[32,1], index: 6, kind: input, shape index: {}]   ;;  %s818_s7 = inlined_call_operand.vmem [shape: bf16[1,32], index: 7, kind: input, shape index: {}]   ;;  %s819_s8 = inlined_call_operand.<no memory space> [shape: f32[1,1], index: 8, kind: input, shape index: {}]   ;;  %s820_s11 = inlined_call_operand.hbm [shape: f32[1,19], index: 11, kind: output, shape index: {}]   ;;  %s821_s9 = inlined_call_operand.<no memory space> [shape: f32[1,1], index: 9, kind: input, shape index: {}]   ;;  %s822_s10 = inlined_call_operand.<no memory space> [shape: f32[1,1], index: 10, kind: input, shape index: {}]  }
   0x1   :  { %v16_v0 = vstv %s819_s8  ;;  %v18_v1 = vstv %s821_s9  ;;  %v20_v2 = vstv %s822_s10 }
   0x2   :  { %17 = vst [vmem:[#allocation2] sm:$0x1] %v16_v0  ;;  %19 = vst [vmem:[#allocation3] sm:$0x1] %v18_v1 }
   0x3   :  { %21 = vst [vmem:[#allocation4] sm:$0x1] %v20_v2 }
   0x4   :  { %v46_v3 = vld [vmem:[%s811_s0] sm:$0xff]  ;;  %v47_v4 = vld [vmem:[%s811_s0 + $0x8] sm:$0xff]  ;;  %v48_v9 = vld [vmem:[%s811_s0 + $0x10] sm:$0x7]  ;;  %v643_v10 = vmov 0   ;;  %vm153_vm0 = vcmask 261120  }
   0x5   :  { %v503_v5 = vld [vmem:[%s812_s1] ss:$0 sm:$0xff]  ;;  %587 = vset.pattern.permute.xlu0 %v643_v10  ;;  %588 = vset.pattern.permute.xlu1 %v643_v10  ;;  %v87_v20 = vld [vmem:[%s815_s4 + $0x10] sm:$0xff]  ;;  %v86_v22 = vld [vmem:[%s815_s4 + $0x8] sm:$0xff] }
   0x6   :  { %v56_v6 = vsub.f32 %v46_v3, %v503_v5  ;;  %v57_v7 = vsub.f32 %v47_v4, %v503_v5  ;;  %v504_v8 = vld [vmem:[%s813_s2] ss:$0 sm:$0xff]  ;;  %v58_v11 = vsub.f32 %v48_v9, %v503_v5  ;;  %105 = vperm.xlu1 %588, %v87_v20   ;;  %v88_v24 = vld [vmem:[%s815_s4 + $0x18] sm:$0xff]  ;;  %v90_v27 = vld [vmem:[%s815_s4 + $0x28] sm:$0xff] }
   0x7   :  { %v589_v12 = vld [vmem:[%s814_s3] sm:$0xff]  }
   0x8   :  { %v66_v13 = vmul.f32 %v504_v8, %v56_v6  ;;  %v67_v14 = vmul.f32 %v504_v8, %v57_v7  ;;  %v68_v15 = vmul.f32 %v504_v8, %v58_v11  ;;  %553 = vmatprep.mubr.msk.bf16.mxu0 %vm153_vm0, %v589_v12  ;;  %v85_v18 = vld [vmem:[%s815_s4] sm:$0xff] }
   0x9   :  { %95 = vperm.xlu0 %587, %v85_v18   ;;  %v89_v26 = vld [vmem:[%s815_s4 + $0x20] sm:$0xff] }
   0xa   :  { %v505_v16 = vclamps-f32 %v66_v13, 5.0  ;;  %v506_v17 = vclamps-f32 %v67_v14, 5.0  ;;  %v507_v19 = vclamps-f32 %v68_v15, 5.0  ;;  %110 = vperm.xlu1 %588, %v88_v24  }
   0xc   :  { %v75_v21 = vpack.c.bf16 %v506_v17, %v505_v16  ;;  %v76_v23 = vpack.c.bf16 %v507_v19, %v507_v19 }
   0xd   :  { %100 = vperm.xlu0 %587, %v86_v22  }
   0xe   :  { %581 = vmatprep.subr.msk.bf16.mxu0 %vm153_vm0, %v75_v21  ;;  %v167_v25 = vsel %vm153_vm0, %v75_v21, 0 }
   0xf   :  { %550 = vmatpush3.bf16.xpose.msra.mxu0 %v167_v25 }
  0x10   :  { %582 = vmatprep.subr.msk.bf16.mxu0 %vm153_vm0, %v76_v23 }
  0x11   :  { %22 = vsyncpa [#allocation6], 0  ;;  %115 = vperm.xlu0 %587, %v89_v26   ;;  %v170_v28 = vsel %vm153_vm0, %v76_v23, 0  ;;  %v91_v29 = vld [vmem:[%s815_s4 + $0x30] sm:$0xff]  ;;  %120 = vperm.xlu1 %588, %v90_v27   ;;  %v92_v30 = vld [vmem:[%s815_s4 + $0x38] sm:$0xff]  ;;  %vm327_vm1 = vcmask 523264  }
  0x12   :  { %v293_v31 = vld [vmem:[%s817_s6] sm:$0xff]  ;;  %v294_v32 = vld [vmem:[%s817_s6 + $0x8] sm:$0xff]  ;;  %v591_v34 = vld [vmem:[%s814_s3 + $0x10] sm:$0xff]   ;;  %vm645_vm10 = vmmov 0   ;;  %s646_s17 = smov [#allocation5]   ;;  %vm487_vm15 = vcmask 147456  }
  0x13   :  { %v590_v33 = vld [vmem:[%s814_s3 + $0x8] sm:$0xff]   ;;  %v295_v35 = vld [vmem:[%s817_s6 + $0x10] sm:$0xff]  ;;  %v296_v36 = vld [vmem:[%s817_s6 + $0x18] sm:$0xff]  ;;  %s495_s18 = sshll.u32 %s646_s17, 4  ;;  %s496_s18 = int_to_ptr.vmem [resolvable:$true] %s495_s18 }
  0x14   :  { %v410_v37 = vld [vmem:[#allocation2] sm:$0x1]  ;;  %v465_v38 = vld [vmem:[#allocation3] sm:$0x1]  ;;  %v592_v39 = vld [vmem:[%s814_s3 + $0x18] sm:$0xff]   ;;  %s623_s19 = scalar_lea.vmem %s496_s18, 32  ;;  %p624_p1 = scmp.lt.s32.totalorder %s496_s18, %s496_s18 }
  0x15   :  { %125 = vperm.xlu0 %587, %v91_v29   ;;  %130 = vperm.xlu1 %588, %v92_v30   ;;  %v476_v40 = vld [vmem:[#allocation4] sm:$0x1] }
  0x16   :  { %v593_v41 = vld [vmem:[%s816_s5] sm:$0xff]  }
  0x17   :  { %552 = vmatpush3.bf16.xpose.msra.mxu0 %v170_v28  ;;  %569 = vmatprep.mubr.msk.bf16.mxu1 %vm327_vm1, %v593_v41 }
  0x19   :  { %299 = vperm.xlu0 %587, %v293_v31   ;;  %304 = vperm.xlu1 %588, %v294_v32  }
  0x1d   :  { %309 = vperm.xlu0 %587, %v295_v35   ;;  %314 = vperm.xlu1 %588, %v296_v36  }
  0x1e   :  { %554 = vmatmul.mubr.msk.bf16.vlgmr.msra.gmra.mrb[0].mxu0 %vm153_vm0, %v590_v33 }
  0x1f   :  { %557 = vmatprep.mubr.msk.bf16.mxu0 %vm153_vm0, %v591_v34 }
  0x21   :  { %413 = vperm.xlu0 %587, %v410_v37   ;;  %468 = vperm.xlu1 %588, %v465_v38  }
  0x25   :  { %479 = vperm.xlu0 %587, %v476_v40  }
  0x26   :  { %558 = vmatmul.mubr.msk.bf16.gmra.mrb[4].mxu0 %vm153_vm0, %v592_v39 }
  0x85   :  { %v106_v43 = vpop.permute.xlu1 %105 }
  0x88   :  { %v96_v42 = vpop.permute.xlu0 %95 }
  0x89   :  { %v111_v45 = vpop.permute.xlu1 %110 }
  0x8c   :  { %v101_v44 = vpop.permute.xlu0 %100 }
  0x90   :  { %v116_v49 = vpop.permute.xlu0 %115  ;;  %v121_v55 = vpop.permute.xlu1 %120 }
  0x94   :  { %v126_v63 = vpop.permute.xlu0 %125  ;;  %v131_v4 = vpop.permute.xlu1 %130 }
  0xf1   :  { %v555_v46 = vpop.f32.mrb[0].mxu0 }
  0xf2   :  { %v215_v47 = vadd.f32 %v555_v46, %v106_v43  ;;  %v206_v48 = vpop.f32.mrb[1].mxu0  ;;  %v594_v46 = vld [vmem:[%s816_s5 + $0x8] sm:$0xff]  }
  0xf3   :  { %v207_v50 = vadd.f32 %v206_v48, %v96_v42  ;;  %v556_v51 = vpop.f32.mrb[2].mxu0  ;;  %v300_v48 = vpop.permute.xlu0 %299 }
  0xf4   :  { %v247_v52 = vmin.f32 %v215_v47, 0.0  ;;  %v218_v53 = vadd.f32 %v556_v51, %v111_v45  ;;  %v209_v54 = vpop.f32.mrb[3].mxu0  ;;  %vm239_vm2 = vcmp.gt.f32.partialorder %v215_v47, 0.0 }
  0xf5   :  { %v245_v56 = vmin.f32 %v207_v50, 0.0  ;;  %v210_v57 = vadd.f32 %v209_v54, %v101_v44  ;;  %vm237_vm4 = vcmp.gt.f32.partialorder %v207_v50, 0.0 }
  0xf6   :  { %v257_v58 = vmul.f32 1.442695, %v247_v52  ;;  %v248_v59 = vmin.f32 %v218_v53, 0.0  ;;  %vm240_vm3 = vcmp.gt.f32.partialorder %v218_v53, 0.0 }
  0xf7   :  { %v253_v60 = vmul.f32 1.442695, %v245_v56  ;;  %v246_v61 = vmin.f32 %v210_v57, 0.0  ;;  %vm238_vm5 = vcmp.gt.f32.partialorder %v210_v57, 0.0 }
  0xf8   :  { %595 = vpow2.f32 %v257_v58  ;;  %v259_v62 = vmul.f32 1.442695, %v248_v59 }
  0xf9   :  { %597 = vpow2.f32 %v253_v60  ;;  %v255_v0 = vmul.f32 1.442695, %v246_v61  ;;  %v559_v1 = vpop.f32.mrb[4].mxu0 }
  0xfa   :  { %599 = vpow2.f32 %v259_v62  ;;  %v231_v2 = vadd.f32 %v559_v1, %v126_v63  ;;  %v222_v3 = vpop.f32.mrb[5].mxu0 }
  0xfb   :  { %601 = vpow2.f32 %v255_v0  ;;  %v223_v5 = vadd.f32 %v222_v3, %v116_v49  ;;  %v560_v6 = vpop.f32.mrb[6].mxu0  ;;  %v305_v49 = vpop.permute.xlu1 %304 }
  0xfc   :  { %v251_v7 = vmin.f32 %v231_v2, 0.0  ;;  %v234_v8 = vadd.f32 %v560_v6, %v131_v4  ;;  %v225_v9 = vpop.f32.mrb[7].mxu0  ;;  %vm243_vm6 = vcmp.gt.f32.partialorder %v231_v2, 0.0 }
  0xfd   :  { %v249_v10 = vmin.f32 %v223_v5, 0.0  ;;  %v226_v11 = vadd.f32 %v225_v9, %v121_v55  ;;  %vm241_vm8 = vcmp.gt.f32.partialorder %v223_v5, 0.0 }
  0xfe   :  { %v265_v12 = vmul.f32 1.442695, %v251_v7  ;;  %v252_v13 = vmin.f32 %v234_v8, 0.0  ;;  %vm244_vm7 = vcmp.gt.f32.partialorder %v234_v8, 0.0 }
  0xff   :  { %v261_v14 = vmul.f32 1.442695, %v249_v10  ;;  %v250_v15 = vmin.f32 %v226_v11, 0.0  ;;  %vm242_vm9 = vcmp.gt.f32.partialorder %v226_v11, 0.0  ;;  %v315_v54 = vpop.permute.xlu1 %314 }
 0x100   :  { %603 = vpow2.f32 %v265_v12  ;;  %v267_v16 = vmul.f32 1.442695, %v252_v13 }
 0x101   :  { %605 = vpow2.f32 %v261_v14  ;;  %v263_v17 = vmul.f32 1.442695, %v250_v15 }
 0x102   :  { %v596_v18 = vpop.eup %595  ;;  %607 = vpow2.f32 %v267_v16 }
 0x103   :  { %v598_v19 = vpop.eup %597  ;;  %v518_v20 = vadd.f32 -1.0, %v596_v18  ;;  %609 = vpow2.f32 %v263_v17  ;;  %v409_v18 = vld [vmem:[%s818_s7] sm:$0x1]  ;;  %s619_s7 = scalar_lea.vmem %s496_s18, 16 }
 0x104   :  { %v600_v21 = vpop.eup %599  ;;  %v516_v22 = vadd.f32 -1.0, %v598_v19  ;;  %v416_v19 = vlaneseq  ;;  %p620_p0 = scmp.ne.s32.totalorder %s496_s18, %s619_s7  ;;  %p625_p2 = scmp.lt.s32.totalorder %s623_s19, %s619_s7 }
 0x105   :  { %v602_v23 = vpop.eup %601  ;;  %v519_v24 = vadd.f32 -1.0, %v600_v21  ;;  %v279_v26 = vsel %vm239_vm2, %v215_v47, %v518_v20  ;;  %v644_v47 = vmov 0.0  }
 0x106   :  { %v517_v25 = vadd.f32 -1.0, %v602_v23  ;;  %v277_v28 = vsel %vm237_vm4, %v207_v50, %v516_v22  ;;  %v310_v50 = vpop.permute.xlu0 %309  ;;  %v417_v20 = vshrl.u32 %v416_v19, 7  ;;  %p626_p3 = por %p625_p2, %p624_p1 }
 0x107   :  { %v280_v27 = vsel %vm240_vm3, %v218_v53, %v519_v24  ;;  %v469_v24 = vpop.permute.xlu1 %468 }
 0x108   :  { %v278_v29 = vsel %vm238_vm5, %v210_v57, %v517_v25  ;;  %v286_v30 = vpack.c.bf16 %v280_v27, %v279_v26  ;;  %v418_v21 = vsub.s32 0, %v417_v20  ;;  %p627_p4 = pnand %p626_p3, %p620_p0 }
 0x109   :  { %v285_v31 = vpack.c.bf16 %v278_v29, %v277_v28 }
 0x10a   :  { %v604_v32 = vpop.eup %603  ;;  %v414_v22 = vpop.permute.xlu0 %413 }
 0x10b   :  { %v606_v33 = vpop.eup %605  ;;  %v522_v34 = vadd.f32 -1.0, %v604_v32  ;;  %561 = vmatprep.subr.bf16.mxu1 %v285_v31  ;;  %v419_v23 = vrot.slane %v414_v22, %v418_v21 }
 0x10c   :  { %v608_v35 = vpop.eup %607  ;;  %v520_v36 = vadd.f32 -1.0, %v606_v33  ;;  %562 = vmatpush3.bf16.msra.mxu1 %v285_v31 }
 0x10d   :  { %v610_v37 = vpop.eup %609  ;;  %v523_v38 = vadd.f32 -1.0, %v608_v35  ;;  %563 = vmatprep.subr.bf16.mxu1 %v286_v30  ;;  %v283_v40 = vsel %vm243_vm6, %v231_v2, %v522_v34 }
 0x10e   :  { %v521_v39 = vadd.f32 -1.0, %v610_v37  ;;  %v281_v42 = vsel %vm241_vm8, %v223_v5, %v520_v36  ;;  %v480_v28 = vpop.permute.xlu0 %479 }
 0x10f   :  { %v284_v41 = vsel %vm244_vm7, %v234_v8, %v523_v38  ;;  %v485_v33 = vrot.slane %v480_v28, %v418_v21 }
 0x110   :  { %564 = vmatpush3.bf16.msra.mxu1 %v286_v30  ;;  %v282_v43 = vsel %vm242_vm9, %v226_v11, %v521_v39  ;;  %v288_v44 = vpack.c.bf16 %v284_v41, %v283_v40  ;;  %v474_v30 = vrot.slane %v469_v24, %v418_v21 }
 0x111   :  { %v287_v45 = vpack.c.bf16 %v282_v43, %v281_v42 }
 0x113   :  { %565 = vmatprep.subr.bf16.mxu1 %v287_v45 }
 0x114   :  { %566 = vmatpush3.bf16.msra.mxu1 %v287_v45 }
 0x115   :  { %567 = vmatprep.subr.bf16.mxu1 %v288_v44 }
 0x118   :  { %568 = vmatpush3.bf16.msra.mxu1 %v288_v44 }
 0x119   :  { %573 = vmatprep.subr.bf16.mxu1 %v644_v47 }
 0x11b   :  { %570 = vmatmul.mubr.msk.bf16.vlgmr.msra.gmra.mrb[0].mxu1 %vm327_vm1, %v594_v46 }
 0x11c   :  { %577 = vmatprep.mubr.msk.bf16.mxu1 %vm645_vm10, %v644_v47 }
 0x1ee   :  { %v571_v51 = vpop.f32.mrb[0].mxu1 }
 0x1ef   :  { %v377_v52 = vadd.f32 %v571_v51, %v310_v50  ;;  %v368_v53 = vpop.f32.mrb[1].mxu1 }
 0x1f0   :  { %v369_v55 = vadd.f32 %v368_v53, %v300_v48  ;;  %v572_v56 = vpop.f32.mrb[2].mxu1 }
 0x1f1   :  { %v389_v57 = vmin.f32 %v377_v52, 0.0  ;;  %v380_v58 = vadd.f32 %v572_v56, %v315_v54  ;;  %v371_v59 = vpop.f32.mrb[3].mxu1  ;;  %vm385_vm11 = vcmp.gt.f32.partialorder %v377_v52, 0.0 }
 0x1f2   :  { %v387_v60 = vmin.f32 %v369_v55, 0.0  ;;  %v372_v61 = vadd.f32 %v371_v59, %v305_v49  ;;  %vm383_vm13 = vcmp.gt.f32.partialorder %v369_v55, 0.0 }
 0x1f3   :  { %v395_v62 = vmul.f32 1.442695, %v389_v57  ;;  %v390_v63 = vmin.f32 %v380_v58, 0.0  ;;  %vm386_vm12 = vcmp.gt.f32.partialorder %v380_v58, 0.0 }
 0x1f4   :  { %v391_v0 = vmul.f32 1.442695, %v387_v60  ;;  %v388_v1 = vmin.f32 %v372_v61, 0.0  ;;  %vm384_vm14 = vcmp.gt.f32.partialorder %v372_v61, 0.0 }
 0x1f5   :  { %611 = vpow2.f32 %v395_v62  ;;  %v397_v2 = vmul.f32 1.442695, %v390_v63 }
 0x1f6   :  { %613 = vpow2.f32 %v391_v0  ;;  %v393_v3 = vmul.f32 1.442695, %v388_v1 }
 0x1f7   :  { %615 = vpow2.f32 %v397_v2 }
 0x1f8   :  { %617 = vpow2.f32 %v393_v3 }
 0x1ff   :  { %v612_v4 = vpop.eup %611 }
 0x200   :  { %v614_v5 = vpop.eup %613  ;;  %v530_v6 = vadd.f32 -1.0, %v612_v4 }
 0x201   :  { %v616_v7 = vpop.eup %615  ;;  %v528_v8 = vadd.f32 -1.0, %v614_v5 }
 0x202   :  { %v618_v9 = vpop.eup %617  ;;  %v531_v10 = vadd.f32 -1.0, %v616_v7  ;;  %v405_v12 = vsel %vm385_vm11, %v377_v52, %v530_v6 }
 0x203   :  { %v529_v11 = vadd.f32 -1.0, %v618_v9  ;;  %v403_v14 = vsel %vm383_vm13, %v369_v55, %v528_v8 }
 0x204   :  { %v406_v13 = vsel %vm386_vm12, %v380_v58, %v531_v10 }
 0x205   :  { %v408_v15 = vpack.c.bf16 %v406_v13, %v405_v12  ;;  %v404_v16 = vsel %vm384_vm14, %v372_v61, %v529_v11 }
 0x206   :  { %v407_v17 = vpack.c.bf16 %v404_v16, %v403_v14 }
 0x208   :  { %574 = vmatpush3.bf16.msra.mxu1 %v407_v17 }
 0x209   :  { %575 = vmatprep.subr.bf16.mxu1 %v644_v47 }
 0x20c   :  { %576 = vmatpush3.bf16.msra.mxu1 %v408_v15 }
 0x20f   :  { %578 = vmatmul.mubr.msk.bf16.vlgmr.msra.gmra.mrb[4].mxu1 %vm153_vm0, %v409_v18 }
 0x2e2   :  { %v457_v25 = vpop.f32.mrb[4].mxu1 }
 0x2e3   :  { %v458_v26 = vadd.f32 %v457_v25, %v419_v23  ;;  %v579_v27 = vpop.f32.mrb[5].mxu1 }
 0x2e4   :  { %v460_v29 = vpop.f32.mrb[6].mxu1 }
 0x2e5   :  { %v533_v31 = vclamps-f32 %v458_v26, 5.0  ;;  %v580_v32 = vpop.f32.mrb[7].mxu1 }
 0x2e7   :  { %v475_v34 = vmul.f32 %v533_v31, %v474_v30 }
 0x2e9   :  { %v486_v35 = vadd.f32 %v485_v33, %v475_v34 }
 0x2eb   :  { %488 = vst.msk [vmem:[#allocation5] sm:$0x1] %vm487_vm15, %v486_v35 }
 0x2ec   :  { %630 = shalt.err (!%p627_p4)
}
 0x2ed   :  { %s631_s22 = scalar_lea.hbm %s820_s11, 16 }
 0x2ee   :  { %p632_p5 = scmp.ne.s32.totalorder %s820_s11, %s631_s22  ;;  %p635_p6 = scmp.lt.u32.totalorder %s631_s22, %s820_s11 }
 0x2f0   :  { %p637_p7 = pnand %p635_p6, %p632_p5 }
 0x2f2   :  { %640 = shalt.err (!%p637_p7)
}
 0x2f3   :  { %498 = dma.vmem_to_hbm [thread:$0]  %s496_s18, 16, %s820_s11, [#allocation6]  }
 0x2f4   :  { %641 = dma.done.wait [#allocation6], 16  }
 0x2f5   :  { %642 = vsyncadd [#allocation6], 4294967280 }
 0x2f6   :  { %502 = vsyncpa [#allocation6], 1 }

</bundles_post_ra>
